<compile_context>
chip_gen: v6e
topology: v6e:2x2x1
jax: 0.10.0
libtpu: 0.0.40
codegen_flags: <defaults>
</compile_context>

<pallas_src>
import jax
import jax.numpy as jnp
from jax import lax
from jax.experimental import pallas as pl
from jax.experimental.pallas import tpu as pltpu


def _lr_kernel(x_ref, w_ref, b_ref, o_ref):
    # x_ref : (TILE_N, nfeat)   VMEM
    # w_ref : (nclass, nfeat)   VMEM  (PyTorch nn.Linear layout, untransposed)
    # b_ref : (1, nclass)       VMEM
    # o_ref : (TILE_N, nclass)  VMEM
    x = x_ref[...]
    w = w_ref[...]
    b = b_ref[...]

    # Linear layer on the MXU: contract x's feature axis with w's feature axis
    # (i.e. x @ W^T) without materializing a transposed weight in HBM.
    logits = lax.dot_general(
        x, w,
        dimension_numbers=(((1,), (1,)), ((), ())),
        preferred_element_type=jnp.float32,
    ) + b                                                    # (TILE_N, nclass)

    # Numerically stable log_softmax over dim=1 (class axis), f32 throughout.
    m = jnp.max(logits, axis=-1, keepdims=True)
    z = logits - m
    lse = jnp.log(jnp.sum(jnp.exp(z), axis=-1, keepdims=True))
    o_ref[...] = (z - lse).astype(o_ref.dtype)


def _choose_tile_n(n):
    # Prefer MXU/vreg-aligned batch tiles (multiples of 256 fill the
    # 2x256x256 MXU on v6e/v7x; 128 suits v5e). Tiny batches use a single
    # full-size block.
    for t in (1024, 512, 256, 128):
        if n >= t:
            return t
    return n


def lr_forward(x, weight, bias, dropout=0.0, training=False):
    """Pallas implementation of LR.forward (inference mode).

    x:      (N, nfeat) float32
    weight: (nclass, nfeat) float32   (PyTorch nn.Linear layout)
    bias:   (nclass,) float32
    """
    if training and dropout > 0.0:
        # TODO(synk): training-mode dropout (PRNG mask + 1/(1-p) scaling) not
        # implemented; this kernel covers the eval-time forward only.
        raise NotImplementedError("lr_forward only implements eval-mode (no dropout).")

    N, nfeat = x.shape
    nclass = weight.shape[0]
    b2d = bias.reshape(1, nclass)          # keep 2D for VMEM layout

    tile_n = _choose_tile_n(N)
    grid = (pl.cdiv(N, tile_n),)

    itemsize = 4  # float32
    cost = pl.CostEstimate(
        flops=2 * N * nfeat * nclass + 6 * N * nclass,
        transcendentals=N * nclass + N,     # exp per logit + log per row
        bytes_accessed=(x.size + weight.size + bias.size + N * nclass) * itemsize,
    )

    out = pl.pallas_call(
        _lr_kernel,
        out_shape=jax.ShapeDtypeStruct((N, nclass), jnp.float32),
        grid=grid,
        in_specs=[
            # x: tiled along the batch axis -> double-buffered DMA pipeline.
            pl.BlockSpec((tile_n, nfeat), lambda i: (i, 0)),
            # weight/bias: same block for every grid step -> stay VMEM-resident.
            pl.BlockSpec((nclass, nfeat), lambda i: (0, 0)),
            pl.BlockSpec((1, nclass), lambda i: (0, 0)),
        ],
        out_specs=pl.BlockSpec((tile_n, nclass), lambda i: (i, 0)),
        compiler_params=pltpu.CompilerParams(
            # Rows are independent -> batch axis can shard across TensorCores.
            dimension_semantics=("parallel",),
        ),
        cost_estimate=cost,
    )(x, weight, b2d)
    return out


def _reference(x, weight, bias):
    return jax.nn.log_softmax(x @ weight.T + bias, axis=1)


if __name__ == "__main__":
    # Small shapes consistent with the module: batch=8, nfeat=32, nclass=16
    N, nfeat, nclass = 8, 32, 16

    key = jax.random.PRNGKey(0)
    kx, kw, kb, kx2 = jax.random.split(key, 4)

    x = jax.random.normal(kx, (N, nfeat), dtype=jnp.float32)
    # Deterministic init mimicking nn.Linear's uniform(-1/sqrt(nfeat), 1/sqrt(nfeat))
    bound = 1.0 / (nfeat ** 0.5)
    weight = jax.random.uniform(kw, (nclass, nfeat), minval=-bound, maxval=bound,
                                dtype=jnp.float32)
    bias = jax.random.uniform(kb, (nclass,), minval=-bound, maxval=bound,
                              dtype=jnp.float32)

    out = lr_forward(x, weight, bias, dropout=0.5, training=False)
    out = jax.block_until_ready(out)

    ref = _reference(x, weight, bias)
    assert out.shape == (N, nclass)
    assert jnp.allclose(out, ref, atol=1e-5, rtol=1e-5)

    # Second check: batch large enough to exercise the tiled grid, including a
    # partial last tile (Pallas masks the out-of-bounds rows on writeback).
    N2 = 200
    x2 = jax.random.normal(kx2, (N2, nfeat), dtype=jnp.float32)
    out2 = jax.block_until_ready(lr_forward(x2, weight, bias))
    ref2 = _reference(x2, weight, bias)
    assert out2.shape == (N2, nclass)
    assert jnp.allclose(out2, ref2, atol=1e-5, rtol=1e-5)

    print("KERNEL_OK")
</pallas_src>

<mosaic_0001>
module attributes {stable_mosaic.version = 11 : i64} {
  func.func @_lr_kernel(%arg0: i32, %arg1: memref<8x32xf32, #tpu.memory_space<vmem>>, %arg2: memref<16x32xf32, #tpu.memory_space<vmem>>, %arg3: memref<1x16xf32, #tpu.memory_space<vmem>>, %arg4: memref<8x16xf32, #tpu.memory_space<vmem>>) attributes {dimension_semantics = [#tpu.dimension_semantics<parallel>], iteration_bounds = array<i64: 1>, scalar_prefetch = 0 : i64, scratch_operands = 0 : i64, tpu.core_type = #tpu.core_type<tc>, window_params = [{transform_indices = @transform_0, window_bounds = array<i64: 8, 32>}, {pipeline_mode = #tpu.pipeline_mode<synchronous>, transform_indices = @transform_1, window_bounds = array<i64: 16, 32>}, {pipeline_mode = #tpu.pipeline_mode<synchronous>, transform_indices = @transform_2, window_bounds = array<i64: 1, 16>}, {transform_indices = @transform_3, window_bounds = array<i64: 8, 16>}]} {
    %c0 = arith.constant 0 : index
    %c0_0 = arith.constant 0 : index
    %0 = vector.load %arg1[%c0, %c0_0] : memref<8x32xf32, #tpu.memory_space<vmem>>, vector<8x32xf32>
    %c0_1 = arith.constant 0 : index
    %c0_2 = arith.constant 0 : index
    %1 = vector.load %arg2[%c0_1, %c0_2] : memref<16x32xf32, #tpu.memory_space<vmem>>, vector<16x32xf32>
    %c0_3 = arith.constant 0 : index
    %c0_4 = arith.constant 0 : index
    %2 = vector.load %arg3[%c0_3, %c0_4] : memref<1x16xf32, #tpu.memory_space<vmem>>, vector<1x16xf32>
    %cst = arith.constant dense<0.000000e+00> : vector<8x16xf32>
    %3 = tpu.matmul %0, %1, %cst {dimension_numbers = #tpu.dot_dimension_numbers<[1], [1], [0], [0], [0, 0, 1, 0], [], []>} : vector<8x32xf32>, vector<16x32xf32>, vector<8x16xf32> -> vector<8x16xf32>
    %4 = vector.broadcast %2 : vector<1x16xf32> to vector<8x16xf32>
    %5 = arith.addf %3, %4 : vector<8x16xf32>
    %cst_5 = arith.constant dense<0xFF800000> : vector<8xf32>
    %6 = vector.multi_reduction <maximumf>, %5, %cst_5 [1] : vector<8x16xf32> to vector<8xf32>
    %7 = vector.shape_cast %6 : vector<8xf32> to vector<8x1xf32>
    %8 = vector.broadcast %7 : vector<8x1xf32> to vector<8x16xf32>
    %9 = arith.subf %5, %8 : vector<8x16xf32>
    %10 = math.exp %9 : vector<8x16xf32>
    %cst_6 = arith.constant dense<0.000000e+00> : vector<8xf32>
    %11 = vector.multi_reduction <add>, %10, %cst_6 [1] : vector<8x16xf32> to vector<8xf32>
    %12 = vector.shape_cast %11 : vector<8xf32> to vector<8x1xf32>
    %13 = math.log %12 : vector<8x1xf32>
    %14 = vector.broadcast %13 : vector<8x1xf32> to vector<8x16xf32>
    %15 = arith.subf %9, %14 : vector<8x16xf32>
    %c0_7 = arith.constant 0 : index
    %c0_8 = arith.constant 0 : index
    %16 = vector.load %arg4[%c0_7, %c0_8] : memref<8x16xf32, #tpu.memory_space<vmem>>, vector<8x16xf32>
    tpu.vector_store %arg4[%c0_7, %c0_8], %15 {strides = array<i32>} : memref<8x16xf32, #tpu.memory_space<vmem>>, vector<8x16xf32>,
    return
  }
  func.func @transform_0(%arg0: i32) -> (i32, i32) {
    %c0_i32 = arith.constant 0 : i32
    %c0_i32_0 = arith.constant 0 : i32
    return %arg0, %c0_i32 : i32, i32
  }
  func.func @transform_1(%arg0: i32) -> (i32, i32) {
    %c0_i32 = arith.constant 0 : i32
    %c0_i32_0 = arith.constant 0 : i32
    %c0_i32_1 = arith.constant 0 : i32
    return %c0_i32, %c0_i32_0 : i32, i32
  }
  func.func @transform_2(%arg0: i32) -> (i32, i32) {
    %c0_i32 = arith.constant 0 : i32
    %c0_i32_0 = arith.constant 0 : i32
    %c0_i32_1 = arith.constant 0 : i32
    return %c0_i32, %c0_i32_0 : i32, i32
  }
  func.func @transform_3(%arg0: i32) -> (i32, i32) {
    %c0_i32 = arith.constant 0 : i32
    %c0_i32_0 = arith.constant 0 : i32
    return %arg0, %c0_i32 : i32, i32
  }
}

</mosaic_0001>

<bundles_post_ra>
// kernel: tpu_custom_call.1
= control target key start
LH: loop header
LB: loop body
LE: loop exit
PB: predicated region body
PF: predicated region fallthrough
CT: control target
= control target key end

     0   :  { %8 = vsyncpa [#allocation3], 0  ;;  %s294_s0 = inlined_call_operand.hbm [shape: f32[8,32], index: 0, kind: input, shape index: {}]   ;;  %s295_s1 = inlined_call_operand.hbm [shape: f32[16,32], index: 1, kind: input, shape index: {}]   ;;  %s296_s2 = inlined_call_operand.vmem [shape: f32[1,16], index: 2, kind: input, shape index: {}]   ;;  %s297_s3 = inlined_call_operand.hbm [shape: f32[8,16], index: 3, kind: output, shape index: {}]  }
   0x1   :  { %9 = vsyncpa [#allocation6], 0 }
   0x2   :  { %10 = vsyncpa [#allocation4], 0  ;;  %s252_s12 = smov [#allocation2]   ;;  %s253_s14 = smov [#allocation5]  }
   0x3   :  { %s17_s13 = sshll.u32 %s252_s12, 4  ;;  %s26_s15 = sshll.u32 %s253_s14, 4  ;;  %s18_s13 = int_to_ptr.vmem [resolvable:$true] %s17_s13  ;;  %s27_s15 = int_to_ptr.vmem [resolvable:$true] %s26_s15 }
   0x4   :  { %s194_s16 = scalar_lea.vmem %s18_s13, 128  ;;  %p199_p1 = scmp.lt.s32.totalorder %s18_s13, %s18_s13 }
   0x5   :  { %p195_p0 = scmp.ne.s32.totalorder %s18_s13, %s194_s16  ;;  %p200_p2 = scmp.lt.s32.totalorder %s194_s16, %s194_s16 }
   0x7   :  { %p201_p3 = por %p200_p2, %p199_p1 }
   0x9   :  { %p202_p4 = pnand %p201_p3, %p195_p0 }
   0xb   :  { %205 = shalt.err (!%p202_p4)
}
   0xc   :  { %20 = dma.hbm_to_vmem [thread:$0]  %s294_s0, 128, %s18_s13, [#allocation3]  }
   0xd   :  { %s214_s19 = scalar_lea.vmem %s27_s15, 256  ;;  %p219_p6 = scmp.lt.s32.totalorder %s27_s15, %s27_s15 }
   0xe   :  { %p215_p5 = scmp.ne.s32.totalorder %s27_s15, %s214_s19  ;;  %p220_p7 = scmp.lt.s32.totalorder %s214_s19, %s214_s19 }
  0x10   :  { %p221_p8 = por %p220_p7, %p219_p6 }
  0x12   :  { %p222_p9 = pnand %p221_p8, %p215_p5 }
  0x14   :  { %225 = shalt.err (!%p222_p9)
}
  0x15   :  { %s254_s20 = smov 128   ;;  %s255_s21 = smov 8  }
  0x16   :  { %32 = dma.hbm_to_vmem [thread:$0]  %s295_s1, 256, %s27_s15, [#allocation6], %s254_s20, %s254_s20, %s255_s21  }
  0x17   :  { %246 = dma.done.wait [#allocation3], 128  }
  0x18   :  { %247 = vsyncadd [#allocation3], 4294967168 }
  0x19   :  { %248 = dma.done.wait [#allocation6], 256  }
  0x1a   :  { %249 = vsyncadd [#allocation6], 4294967040  ;;  %v256_v0 = vmov 0.0   ;;  %vm257_vm0 = vmmov 0   ;;  %vm51_vm1 = vcmask 261120   ;;  %v43_v1 = vld [vmem:[#allocation5 + $0x8] sm:$0xff] }
  0x1b   :  { %168 = vmatprep.subr.mxu0 %v256_v0  ;;  %172 = vmatprep.mubr.msk.f32.mxu0 %vm257_vm0, %v256_v0  ;;  %v42_v2 = vld [vmem:[#allocation5] sm:$0xff]  ;;  %v41_v3 = vld [vmem:[#allocation2] sm:$0xff]  ;;  %vm131_vm2 = vcmask 130048   ;;  %s258_s1 = smov [#allocation7]  }
  0x1c   :  { %169 = vmatpush3.xpose.msk.msra.mxu0 %vm51_vm1, %v43_v1  ;;  %v161_v4 = vld [vmem:[%s296_s2] ss:$0 sm:$0xff]  ;;  %s151_s2 = sshll.u32 %s258_s1, 4  ;;  %s152_s2 = int_to_ptr.vmem [resolvable:$true] %s151_s2 }
  0x1d   :  { %170 = vmatprep.subr.mxu0 %v256_v0  ;;  %s226_s25 = scalar_lea.vmem %s152_s2, 128  ;;  %p231_p11 = scmp.lt.s32.totalorder %s152_s2, %s152_s2 }
  0x1e   :  { %p227_p10 = scmp.ne.s32.totalorder %s152_s2, %s226_s25  ;;  %p232_p12 = scmp.lt.s32.totalorder %s226_s25, %s226_s25 }
  0x20   :  { %171 = vmatpush3.xpose.msk.msra.mxu0 %vm51_vm1, %v42_v2  ;;  %p233_p13 = por %p232_p12, %p231_p11 }
  0x22   :  { %p234_p0 = pnand %p233_p13, %p227_p10 }
  0x23   :  { %173 = vmatmul.mubr.msk.f32.vlgmr.msra.gmra.mxu0 %vm51_vm1, %v41_v3 }
  0xe3   :  { %v127_v5 = vpop.f32.mrf.mxu0 }
  0xe4   :  { %v128_v6 = vadd.f32 %v161_v4, %v127_v5 }
  0xe5   :  { %v174_v7 = vpop.f32.mrf.mxu0 }
  0xe6   :  { %v132_v8 = vsel %vm131_vm2, %v128_v6, -inf }
  0xe7   :  { %133 = vmax.xlane.f32.xlu0 %v132_v8 }
 0x170   :  { %v134_v9 = vpop.xlane.xlu0 %133 }
 0x171   :  { %v135_v10 = vsub.f32 %v128_v6, %v134_v9 }
 0x173   :  { %v136_v11 = vmul.f32 1.442695, %v135_v10 }
 0x175   :  { %182 = vpow2.f32 %v136_v11 }
 0x182   :  { %v183_v12 = vpop.eup %182 }
 0x183   :  { %v138_v13 = vsel %vm131_vm2, %v183_v12, 0.0 }
 0x184   :  { %139 = vadd.xlane.f32.xlu0 %v138_v13 }
 0x20d   :  { %v140_v14 = vpop.xlane.xlu0 %139 }
 0x20e   :  { %184 = vlog2.f32 %v140_v14 }
 0x21b   :  { %v185_v15 = vpop.eup %184 }
 0x21c   :  { %v142_v16 = vmul.f32 0.6931472, %v185_v15 }
 0x21e   :  { %v143_v17 = vsub.f32 %v135_v10, %v142_v16 }
 0x220   :  { %144 = vst.msk [vmem:[#allocation7] sm:$0xff] %vm131_vm2, %v143_v17 }
 0x221   :  { %237 = shalt.err (!%p234_p0)
}
 0x222   :  { %154 = dma.vmem_to_hbm [thread:$0]  %s152_s2, 128, %s297_s3, [#allocation4]  }
 0x223   :  { %250 = dma.done.wait [#allocation4], 128  }
 0x224   :  { %251 = vsyncadd [#allocation4], 4294967168 }
 0x225   :  { %158 = vsyncpa [#allocation3], 1 }
 0x226   :  { %159 = vsyncpa [#allocation6], 1 }
 0x227   :  { %160 = vsyncpa [#allocation4], 1 }

</bundles_post_ra>
